<compile_context>
chip_gen: v7x
topology: tpu7x:2x2x1
jax: 0.10.0
libtpu: 0.0.40
codegen_flags: <defaults>
</compile_context>

<pallas_src>
import jax
import jax.numpy as jnp
from jax.experimental import pallas as pl
from jax.experimental.pallas import tpu as pltpu

_LANE = 128       # vreg lane width
_SUBLANE = 8      # f32 sublane count
_ROW_TILE = 16    # row alignment safe for both f32 (8,128) and bf16 (16,128) tiling


def _round_up(n, m):
    return (n + m - 1) // m * m


def _cdiv(a, b):
    return -(-a // b)


# ----------------------------------------------------------------------------
# Host-side packing: fuse both MLPs + the scale into one padded parameter slab.
# ----------------------------------------------------------------------------
def _pack_fused_params(diff_params, prior_params, dimensions, scale,
                       dtype=jnp.bfloat16):
    """Returns (packed, layout, in_rows0, out_pad_last).

    packed : (R_total, lane_w) array; lane_w a multiple of 128, all row offsets
             multiples of 16 -> in-kernel static slices are tile aligned for
             both f32 and bf16 packing (no hidden VMEM relayout copies).
    layout : static tuple of (w_off, w_rows, b_off, out_pad) per fused layer.
    """
    L = len(dimensions) - 1
    dims = list(dimensions)
    scale = float(scale)

    fused_out = [(dims[-1] if i == L - 1 else 2 * dims[i + 1]) for i in range(L)]
    out_pads = [_round_up(fo, _LANE) for fo in fused_out]
    lane_w = max(out_pads)
    # NOTE: lane_w could be rounded to 256 on v6e/v7x once it naturally exceeds
    # 128 (full MXU pass); irrelevant at these dims.
    in_rows = [_round_up(dims[0], _ROW_TILE)] + [out_pads[i - 1] for i in range(1, L)]
    # NOTE: the block-diagonal hidden fusion is only "free" while 2*hidden <=
    # 128 (hides under one MXU tile).  For larger hidden widths switch to two
    # lane-disjoint matmuls on the shared slab to avoid 2x wasted MACs.

    blocks, layout, off = [], [], 0
    for i in range(L):
        wd = jnp.asarray(diff_params[2 * i], jnp.float32)            # (in, out)
        bd = jnp.asarray(diff_params[2 * i + 1], jnp.float32).reshape(1, -1)
        wp = jnp.asarray(prior_params[2 * i], jnp.float32)
        bp = jnp.asarray(prior_params[2 * i + 1], jnp.float32).reshape(1, -1)

        rows = in_rows[i]
        wblk = jnp.zeros((rows, lane_w), jnp.float32)
        bblk = jnp.zeros((_ROW_TILE, lane_w), jnp.float32)

        if L == 1:
            # Single linear layer: fold everything -> W_diff + scale*W_prior.
            wblk = wblk.at[:dims[0], :dims[1]].set(wd + scale * wp)
            bblk = bblk.at[0:1, :dims[1]].set(bd + scale * bp)
        elif i == 0:
            h = dims[1]
            wblk = wblk.at[:dims[0], :h].set(wd)
            wblk = wblk.at[:dims[0], h:2 * h].set(wp)
            bblk = bblk.at[0:1, :h].set(bd)
            bblk = bblk.at[0:1, h:2 * h].set(bp)
        elif i < L - 1:
            hi, ho = dims[i], dims[i + 1]
            wblk = wblk.at[:hi, :ho].set(wd)
            wblk = wblk.at[hi:2 * hi, ho:2 * ho].set(wp)
            bblk = bblk.at[0:1, :ho].set(bd)
            bblk = bblk.at[0:1, ho:2 * ho].set(bp)
        else:
            hi, do = dims[i], dims[-1]
            wblk = wblk.at[:hi, :do].set(wd)
            wblk = wblk.at[hi:2 * hi, :do].set(scale * wp)   # scale folded in
            bblk = bblk.at[0:1, :do].set(bd + scale * bp)    # scale folded in

        w_off = off
        b_off = off + rows
        layout.append((w_off, rows, b_off, out_pads[i]))
        blocks.extend([wblk, bblk])
        off = b_off + _ROW_TILE

    packed = jnp.concatenate(blocks, axis=0).astype(dtype)
    return packed, tuple(layout), in_rows[0], out_pads[-1]


# ----------------------------------------------------------------------------
# Kernel
# ----------------------------------------------------------------------------
def _make_kernel(layout, n_layers):
    """Fused forward over one batch tile. `layout` is static (Python ints)."""

    def kernel(x_ref, p_ref, o_ref):
        p_dt = p_ref.dtype
        h = x_ref[...]                                   # (TB, in0_pad), param dtype
        for i, (w_off, rows, b_off, out_pad) in enumerate(layout):
            # Static, tile-aligned slices of the packed parameter slab.
            w = p_ref[w_off:w_off + rows, 0:out_pad]     # (rows, out_pad)
            b = p_ref[b_off:b_off + 1, 0:out_pad]        # (1, out_pad)
            h = jnp.dot(h.astype(p_dt), w,               # bf16/f32 MXU, f32 acc
                        preferred_element_type=jnp.float32) + b.astype(jnp.float32)
            if i < n_layers - 1:
                h = jnp.maximum(h, 0.0)                  # ReLU on hidden layers
        o_ref[...] = h.astype(o_ref.dtype)               # lane-dense store

    return kernel


# ----------------------------------------------------------------------------
# Batch tiling heuristic
# ----------------------------------------------------------------------------
def _choose_batch_tiling(B, target_tile=2048, min_grid_steps=2):
    """Large tiles (few 0.35us grid steps), bounded padding waste, and an even
    step count >= 2 (when there are enough rows) so the "parallel" batch axis
    can shard across both v7x TensorCores."""
    b8 = _round_up(max(B, 1), _SUBLANE)
    n_steps = _cdiv(b8, target_tile)
    if min_grid_steps > 1 and b8 >= min_grid_steps * _ROW_TILE:
        n_steps = max(n_steps, min_grid_steps)
        if n_steps % 2:
            n_steps += 1                    # balanced two-core split on v7x
    batch_tile = _round_up(_cdiv(b8, n_steps), _ROW_TILE)
    b_pad = batch_tile * n_steps
    return batch_tile, b_pad


# ----------------------------------------------------------------------------
# Wrapper
# ----------------------------------------------------------------------------
def dqn_with_prior_forward(x, diff_params, prior_params, dimensions,
                           scale=5.0, batch_tile=None, target_tile=2048,
                           min_grid_steps=2, param_dtype=jnp.bfloat16,
                           out_dtype=jnp.float32, return_padded=False):
    """x: (B, dims[0]).  *_params: flat [W0, b0, W1, b1, ...] with Wi (in, out),
    bi (1, out).  Returns (B, dims[-1]) = f_diff(x) + scale * f_prior(x)."""
    B, F = x.shape
    dout = dimensions[-1]
    assert F == dimensions[0], "feature dim mismatch"

    packed, layout, in0, out_pad = _pack_fused_params(
        diff_params, prior_params, dimensions, scale, dtype=param_dtype)

    if batch_tile is None:
        batch_tile, b_pad = _choose_batch_tiling(B, target_tile, min_grid_steps)
    else:
        batch_tile = _round_up(batch_tile, _ROW_TILE)
        b_pad = _round_up(_round_up(B, _SUBLANE), batch_tile)

    # Fast path: skip materializing a padded/cast copy of x when possible.
    if B == b_pad and F == in0 and x.dtype == param_dtype:
        x_in = x
    else:
        x_in = jnp.zeros((b_pad, in0), param_dtype).at[:B, :F].set(
            x.astype(param_dtype))

    kernel = _make_kernel(layout, len(dimensions) - 1)
    grid = (b_pad // batch_tile,)

    out = pl.pallas_call(
        kernel,
        out_shape=jax.ShapeDtypeStruct((b_pad, out_pad), out_dtype),
        grid_spec=pltpu.PrefetchScalarGridSpec(
            num_scalar_prefetch=0,
            grid=grid,
            in_specs=[
                # batch tile of activations
                pl.BlockSpec((batch_tile, in0), lambda i: (i, 0)),
                # packed weights: constant index_map -> single DMA, VMEM-resident
                # across grid steps.  (pl.Buffered(1) would shave the second
                # resident buffer; skipped -- only ~75-150 KB at these dims.)
                pl.BlockSpec(packed.shape, lambda i: (0, 0)),
            ],
            out_specs=pl.BlockSpec((batch_tile, out_pad), lambda i: (i, 0)),
        ),
        compiler_params=pltpu.CompilerParams(
            dimension_semantics=("parallel",)),
    )(x_in, packed)

    if return_padded:
        return out
    return out[:B, :dout]


# ----------------------------------------------------------------------------
# Init helpers + pure-JAX reference
# ----------------------------------------------------------------------------
def _xavier_uniform(key, fan_in, fan_out):
    limit = jnp.sqrt(6.0 / (fan_in + fan_out))
    return jax.random.uniform(key, (fan_in, fan_out), jnp.float32,
                              minval=-limit, maxval=limit)


def init_mlp_params(key, dimensions, bias_fill=None):
    """Flat [W0, b0, W1, b1, ...] with W (in, out) and b (1, out)."""
    params = []
    for i in range(len(dimensions) - 1):
        key, wk, bk = jax.random.split(key, 3)
        w = _xavier_uniform(wk, dimensions[i], dimensions[i + 1])
        if bias_fill is not None:
            b = jnp.full((1, dimensions[i + 1]), bias_fill, jnp.float32)
        else:
            b = jax.random.uniform(bk, (1, dimensions[i + 1]), jnp.float32,
                                   minval=-0.1, maxval=0.1)
        params.extend([w, b])
    return params


def _reference_forward(x, diff_params, prior_params, scale):
    def mlp(h, plist):
        n = len(plist) // 2
        for i in range(n):
            h = jnp.dot(h, plist[2 * i],
                        precision=jax.lax.Precision.HIGHEST) + plist[2 * i + 1]
            if i < n - 1:
                h = jnp.maximum(h, 0.0)
        return h
    return mlp(x, diff_params) + scale * mlp(x, prior_params)


if __name__ == "__main__":
    # DQN head: state_dim=16, two hidden layers of 32, n_actions=4.
    dimensions = [16, 32, 32, 4]
    batch = 32
    scale = 5.0

    key = jax.random.PRNGKey(0)
    kx, kd, kp = jax.random.split(key, 3)

    x = jax.random.normal(kx, (batch, dimensions[0]), jnp.float32)
    # f_diff: mimics MLP.initialize() -> xavier_uniform weights, bias = 0.1
    diff_params = init_mlp_params(kd, dimensions, bias_fill=0.1)
    # f_prior: frozen prior network, deterministic random init
    prior_params = init_mlp_params(kp, dimensions, bias_fill=None)

    ref = _reference_forward(x, diff_params, prior_params, scale)

    # 1) f32 parameter path (tight check vs. the f32 reference).  Uses the
    #    default tiling heuristic (grid=(2,), 16-row tiles) + the x fast path.
    out_f32 = dqn_with_prior_forward(x, diff_params, prior_params, dimensions,
                                     scale=scale, param_dtype=jnp.float32)
    out_f32 = jax.block_until_ready(out_f32)
    assert out_f32.shape == (batch, dimensions[-1])
    assert jnp.allclose(out_f32, ref, atol=1e-3, rtol=1e-3), "f32 mismatch"

    # 2) Default path: bf16 params (half the DMA, single-pass MXU) and bf16
    #    writeback (half the output bytes).  Loose tolerance for bf16 rounding.
    out_bf16 = dqn_with_prior_forward(x, diff_params, prior_params, dimensions,
                                      scale=scale, out_dtype=jnp.bfloat16)
    out_bf16 = jax.block_until_ready(out_bf16)
    assert out_bf16.shape == (batch, dimensions[-1])
    assert jnp.allclose(out_bf16.astype(jnp.float32), ref,
                        atol=2e-1, rtol=5e-2), "bf16 mismatch"

    print("KERNEL_OK")
</pallas_src>

<mosaic_0001>
module attributes {stable_mosaic.version = 11 : i64} {
  func.func @kernel(%arg0: i32, %arg1: memref<16x16xf32, #tpu.memory_space<vmem>>, %arg2: memref<320x128xf32, #tpu.memory_space<vmem>>, %arg3: memref<16x128xf32, #tpu.memory_space<vmem>>) attributes {dimension_semantics = [#tpu.dimension_semantics<parallel>], iteration_bounds = array<i64: 2>, scalar_prefetch = 0 : i64, scratch_operands = 0 : i64, tpu.core_type = #tpu.core_type<tc>, window_params = [{transform_indices = @transform_0, window_bounds = array<i64: 16, 16>}, {pipeline_mode = #tpu.pipeline_mode<synchronous>, transform_indices = @transform_1, window_bounds = array<i64: 320, 128>}, {transform_indices = @transform_2, window_bounds = array<i64: 16, 128>}]} {
    %c0 = arith.constant 0 : index
    %c0_0 = arith.constant 0 : index
    %0 = vector.load %arg1[%c0, %c0_0] : memref<16x16xf32, #tpu.memory_space<vmem>>, vector<16x16xf32>
    %c0_1 = arith.constant 0 : index
    %c0_2 = arith.constant 0 : index
    %1 = vector.load %arg2[%c0_1, %c0_2] : memref<320x128xf32, #tpu.memory_space<vmem>>, vector<16x128xf32>
    %c16 = arith.constant 16 : index
    %c0_3 = arith.constant 0 : index
    %2 = vector.load %arg2[%c16, %c0_3] : memref<320x128xf32, #tpu.memory_space<vmem>>, vector<1x128xf32>
    %cst = arith.constant dense<0.000000e+00> : vector<16x128xf32>
    %3 = tpu.matmul %0, %1, %cst {dimension_numbers = #tpu.dot_dimension_numbers<[1], [0], [0], [1], [0, 0, 1, 1], [], []>} : vector<16x16xf32>, vector<16x128xf32>, vector<16x128xf32> -> vector<16x128xf32>
    %4 = vector.broadcast %2 : vector<1x128xf32> to vector<16x128xf32>
    %5 = arith.addf %3, %4 : vector<16x128xf32>
    %cst_4 = arith.constant 0.000000e+00 : f32
    %6 = vector.broadcast %cst_4 : f32 to vector<16x128xf32>
    %7 = arith.maximumf %5, %6 : vector<16x128xf32>
    %c32 = arith.constant 32 : index
    %c0_5 = arith.constant 0 : index
    %8 = vector.load %arg2[%c32, %c0_5] : memref<320x128xf32, #tpu.memory_space<vmem>>, vector<128x128xf32>
    %c160 = arith.constant 160 : index
    %c0_6 = arith.constant 0 : index
    %9 = vector.load %arg2[%c160, %c0_6] : memref<320x128xf32, #tpu.memory_space<vmem>>, vector<1x128xf32>
    %cst_7 = arith.constant dense<0.000000e+00> : vector<16x128xf32>
    %10 = tpu.matmul %7, %8, %cst_7 {dimension_numbers = #tpu.dot_dimension_numbers<[1], [0], [0], [1], [0, 0, 1, 1], [], []>} : vector<16x128xf32>, vector<128x128xf32>, vector<16x128xf32> -> vector<16x128xf32>
    %11 = vector.broadcast %9 : vector<1x128xf32> to vector<16x128xf32>
    %12 = arith.addf %10, %11 : vector<16x128xf32>
    %cst_8 = arith.constant 0.000000e+00 : f32
    %13 = vector.broadcast %cst_8 : f32 to vector<16x128xf32>
    %14 = arith.maximumf %12, %13 : vector<16x128xf32>
    %c176 = arith.constant 176 : index
    %c0_9 = arith.constant 0 : index
    %15 = vector.load %arg2[%c176, %c0_9] : memref<320x128xf32, #tpu.memory_space<vmem>>, vector<128x128xf32>
    %c304 = arith.constant 304 : index
    %c0_10 = arith.constant 0 : index
    %16 = vector.load %arg2[%c304, %c0_10] : memref<320x128xf32, #tpu.memory_space<vmem>>, vector<1x128xf32>
    %cst_11 = arith.constant dense<0.000000e+00> : vector<16x128xf32>
    %17 = tpu.matmul %14, %15, %cst_11 {dimension_numbers = #tpu.dot_dimension_numbers<[1], [0], [0], [1], [0, 0, 1, 1], [], []>} : vector<16x128xf32>, vector<128x128xf32>, vector<16x128xf32> -> vector<16x128xf32>
    %18 = vector.broadcast %16 : vector<1x128xf32> to vector<16x128xf32>
    %19 = arith.addf %17, %18 : vector<16x128xf32>
    %c0_12 = arith.constant 0 : index
    %c0_13 = arith.constant 0 : index
    %20 = vector.load %arg3[%c0_12, %c0_13] : memref<16x128xf32, #tpu.memory_space<vmem>>, vector<16x128xf32>
    tpu.vector_store %arg3[%c0_12, %c0_13], %19 {strides = array<i32>} : memref<16x128xf32, #tpu.memory_space<vmem>>, vector<16x128xf32>,
    return
  }
  func.func @transform_0(%arg0: i32) -> (i32, i32) {
    %c0_i32 = arith.constant 0 : i32
    %c0_i32_0 = arith.constant 0 : i32
    return %arg0, %c0_i32 : i32, i32
  }
  func.func @transform_1(%arg0: i32) -> (i32, i32) {
    %c0_i32 = arith.constant 0 : i32
    %c0_i32_0 = arith.constant 0 : i32
    %c0_i32_1 = arith.constant 0 : i32
    return %c0_i32, %c0_i32_0 : i32, i32
  }
  func.func @transform_2(%arg0: i32) -> (i32, i32) {
    %c0_i32 = arith.constant 0 : i32
    %c0_i32_0 = arith.constant 0 : i32
    return %arg0, %c0_i32 : i32, i32
  }
}

</mosaic_0001>

<bundles_post_ra>
// kernel: tpu_custom_call.1
= control target key start
LH: loop header
LB: loop body
LE: loop exit
PB: predicated region body
PF: predicated region fallthrough
CT: control target
= control target key end

     0   :  { %7 = vsyncpa [#allocation3], 0  ;;  %s1052_s0 = inlined_call_operand.vmem [shape: f32[32,16], index: 0, kind: input, shape index: {}]   ;;  %s1053_s1 = inlined_call_operand.hbm [shape: f32[320,128], index: 1, kind: input, shape index: {}]   ;;  %s1054_s2 = inlined_call_operand.hbm [shape: f32[32,128], index: 2, kind: output, shape index: {}]  }
   0x1   :  { %8 = vsyncpa [#allocation4], 0 }
   0x2   :  { %10 = vsyncpa [#allocation4 + $0x1], 0  ;;  %s913_s9 = smov 0   ;;  %s915_s10 = smov 0  }
   0x3   :  { %s917_s11 = smov 0   ;;  %s919_s12 = smov 0  }
   0x4 LB: > { %s934_s13 = sadd.s32 4294967295, %s890_s12   ;;  %s537_s14 = sadd.s32 4294967294, %s890_s12   ;;  %s890_s12 = sphi %s919_s12, %s1070_s12   ;;  %s886_s11 = sphi %s917_s11, %s1069_s11   ;;  %s882_s10 = sphi %s915_s10, %s1068_s10   ;;  %s878_s9 = sphi %s913_s9, %s1067_s9  }
   0x5   : > { %s938_s15 = sadd.s32 1, %s890_s12   ;;  %s70_s16 = sadd.s32 1, %s886_s11 }
   0x6   : > { %s67_s17 = ssub.s32 %s890_s12, %s938_s15  ;;  %p80_p0 = scmp.ne.s32.totalorder %s886_s11, %s882_s10 }
   0x7   : > { %p68_p1 = scmp.eq.s32.totalorder %s67_s17, 0  ;;  %p81_p2 = scmp.eq.s32.totalorder %s934_s13, 1 }
   0x8   : > { %p86_p3 = scmp.ne.s32.totalorder %s882_s10, %s878_s9  ;;  %p87_p4 = scmp.eq.s32.totalorder %s537_s14, 1 }
   0x9   : > { %s949_s18 = scalar_select %p68_p1, %s886_s11, %s70_s16  }
   0xa   : > { %p951_p5 = por %p81_p2, %p80_p0  ;;  %p955_p6 = por %p87_p4, %p86_p3 }
   0xb   : > { %p538_p7 = scmp.ge.s32.totalorder %s890_s12, 1  ;;  %p94_p8 = scmp.lt.s32.totalorder %s890_s12, 3 }
   0xc   : > { %s1058_s19 = scalar_select %p951_p5, 1, 0 }
   0xd   : > { %s1059_s20 = scalar_select %p955_p6, 1, 0 }
   0xe   : > { %p1055_p9 = scmp.eq.s32.totalorder %s934_s13, 0  ;;  %p962_p10 = pnand %p538_p7, %p94_p8 }
   0xf   : > { %s892_s22 = smov [#allocation2]   ;;  %s796_s27 = scalar_lea.hbm %s1053_s1, 5120 }
  0x10   : > { %s1060_s21 = scalar_select %p962_p10, 1, 0 }
  0x11   : > { %s106_s23 = sshll.u32 %s892_s22, 4  ;;  %p748_p11 = pneg %p962_p10  ;;  %s107_s23 = int_to_ptr.vmem [resolvable:$true] %s106_s23 }
  0x12   : > { %p797_p13 = scmp.ne.s32.totalorder %s1053_s1, %s796_s27  ;;  %p803_p3 = scmp.lt.u32.totalorder %s796_s27, %s1053_s1 }
  0x13   : > { %p970_p12 = pnand %p1055_p9, %p748_p11 }
  0x15   : > { %p798_p0 = pneg %p970_p12 }
  0x17   : > { %p799_p1 = pnand %p798_p0, %p797_p13 }
  0x19   : > { %p800_p2 = pneg %p799_p1 }
  0x1b   : > { %p805_p4 = pnand %p803_p3, %p800_p2 }
  0x1d   : > { %808 = shalt.err (!%p805_p4)
}
  0x1e   : > { %s809_s4 = scalar_lea.vmem %s107_s23, 5120  ;;  %p817_p9 = scmp.lt.s32.totalorder %s107_s23, %s107_s23 }
  0x1f   : > { %p810_p7 = scmp.ne.s32.totalorder %s107_s23, %s809_s4  ;;  %p818_p6 = scmp.lt.s32.totalorder %s809_s4, %s809_s4 }
  0x21   : > { %p812_p8 = pnand %p810_p7, %p798_p0  ;;  %p819_p5 = por %p818_p6, %p817_p9 }
  0x23   : > { %p813_p11 = pneg %p812_p8 }
  0x25   : > { %p820_p10 = pnand %p819_p5, %p813_p11 }
  0x27   : > { %823 = shalt.err (!%p820_p10)
}
  0x28   : > { %s893_s5 = smov 128   ;;  %s894_s6 = smov 8  }
  0x29   : > { %751 = dma.hbm_to_vmem [thread:$0]  (!%p970_p12), %s1053_s1, 5120, %s107_s23, [#allocation3], %s893_s5, %s893_s5, %s894_s6  }
  0x2a   : > { %p1062_p13 = scmp.ne.s32.totalorder %s1060_s21, 0 }
  0x2b   : > { %p1063_p1 = scmp.eq.s32.totalorder (!%p1062_p13), %s934_s13, 0 }
  0x2c   : > { %131 = sbr.rel (%p1062_p13) target bundleno = 726 (0x2d6), region = 28 }
  0x33   : > { %869 = dma.done.wait (%p1063_p1), [#allocation3], 5120   ;;  %p1064_p0 = pmov %p1063_p1 }
  0x34   : > { %s544_s14 = sshll.u32 %s934_s13, 1  ;;  %vm169_vm0 = vcmask 130048   ;;  %v162_v0 = vld [vmem:[#allocation2] sm:$0xff]  ;;  %v163_v1 = vld [vmem:[#allocation2 + $0x8] sm:$0xff]  ;;  %v255_v7 = vld [vmem:[#allocation2 + $0x30] sm:$0xff]  ;;  %s150_s21 = sand.u32 1, %s882_s10  }
  0x35   : > { %871 = vsyncadd (%p1064_p0), [#allocation3], 4294962176  ;;  %p154_p5 = scmp.lt.s32.totalorder %s544_s14, 3  ;;  %v674_v3 = vpack.c.bf16 %v163_v1, %v162_v0  ;;  %v253_v4 = vld [vmem:[#allocation2 + $0x20] sm:$0xff]  ;;  %v254_v5 = vld [vmem:[#allocation2 + $0x28] sm:$0xff]  ;;  %s543_s23 = sshll.u32 %s150_s21, 4 }
  0x36   : > { %v678_v6 = vpack.c.bf16 %v254_v5, %v253_v4  ;;  %v256_v8 = vld [vmem:[#allocation2 + $0x38] sm:$0xff]  ;;  %v257_v10 = vld [vmem:[#allocation2 + $0x40] sm:$0xff]  ;;  %v258_v11 = vld [vmem:[#allocation2 + $0x48] sm:$0xff]  ;;  %s152_s25 = scalar_lea.vmem [#allocation5], %s543_s23  ;;  %s556_s27 = sshll.u32 %s934_s13, 8 }
  0x37   : > { %s1072_s14 = smov (!%p154_p5, %s544_s14), 3  ;;  %675 = vmatprep.subr.bf16.mxu0 %v674_v3  ;;  %v682_v9 = vpack.c.bf16 %v256_v8, %v255_v7  ;;  %v686_v13 = vpack.c.bf16 %v258_v11, %v257_v10  ;;  %v259_v14 = vld [vmem:[#allocation2 + $0x50] sm:$0xff]  ;;  %v260_v15 = vld [vmem:[#allocation2 + $0x58] sm:$0xff]  ;;  %v261_v17 = vld [vmem:[#allocation2 + $0x60] sm:$0xff]  ;;  %s463_s26 = sshll.u32 %s152_s25, 4  ;;  %s1004_s26 = int_to_ptr.vmem [resolvable:$true] %s463_s26 }
  0x38   : > { %s545_s16 = sshll.u32 %s1072_s14, 3  ;;  %677 = vmatpush3.bf16.msra.mxu0 %v674_v3  ;;  %679 = vmatprep.subr.bf16.mxu1 %v678_v6  ;;  %v690_v16 = vpack.c.bf16 %v260_v15, %v259_v14  ;;  %v262_v18 = vld [vmem:[#allocation2 + $0x68] sm:$0xff]  ;;  %v263_v20 = vld [vmem:[#allocation2 + $0x70] sm:$0xff]  ;;  %v264_v21 = vld [vmem:[#allocation2 + $0x78] sm:$0xff]  ;;  %s1009_s30 = scalar_lea.hbm %s1054_s2, %s556_s27 }
  0x39   : > { %s157_s24 = scalar_lea.vmem %s1052_s0, %s545_s16  ;;  %681 = vmatpush3.bf16.msra.mxu1 %v678_v6  ;;  %v694_v19 = vpack.c.bf16 %v262_v18, %v261_v17  ;;  %v698_v22 = vpack.c.bf16 %v264_v21, %v263_v20  ;;  %v265_v23 = vld [vmem:[#allocation2 + $0x80] sm:$0xff]  ;;  %v266_v24 = vld [vmem:[#allocation2 + $0x88] sm:$0xff]  ;;  %v267_v26 = vld [vmem:[#allocation2 + $0x90] sm:$0xff]  ;;  %s1011_s3 = scalar_lea.sflag [#allocation4], %s150_s21 }
  0x3a   : > { %v160_v2 = vld [vmem:[%s157_s24] sm:$0xff]  ;;  %v161_v12 = vld [vmem:[%s157_s24 + $0x8] sm:$0xff]  ;;  %683 = vmatprep.subr.bf16.mxu1 %v682_v9  ;;  %v702_v25 = vpack.c.bf16 %v266_v24, %v265_v23  ;;  %v268_v27 = vld [vmem:[#allocation2 + $0x98] sm:$0xff]  ;;  %s824_s4 = scalar_lea.vmem %s1004_s26, 256  ;;  %p1065_p9 = scmp.ne.s32.totalorder %s1058_s19, 0 }
  0x3b   : > { %601 = vmatprep.mubr.msk.f32.mxu0 %vm169_vm0, %v160_v2  ;;  %v706_v28 = vpack.c.bf16 %v268_v27, %v267_v26  ;;  %v351_v29 = vld [vmem:[#allocation2 + $0xb0] sm:$0xff]  ;;  %v352_v30 = vld [vmem:[#allocation2 + $0xb8] sm:$0xff]  ;;  %v353_v31 = vld [vmem:[#allocation2 + $0xc0] sm:$0xff]  ;;  %p825_p6 = scmp.ne.s32.totalorder %s1004_s26, %s824_s4  ;;  %s895_s13 = smov [#allocation5]  }
  0x3c   : > { %602 = vmatmul.mubr.msk.f32.vlgmr.msra.gmra.mrb[0].mxu0 %vm169_vm0, %v161_v12  ;;  %v710_v32 = vpack.c.bf16 %v352_v30, %v351_v29  ;;  %v354_v33 = vld [vmem:[#allocation2 + $0xc8] sm:$0xff]  ;;  %v355_v35 = vld [vmem:[#allocation2 + $0xd0] sm:$0xff]  ;;  %v356_v36 = vld [vmem:[#allocation2 + $0xd8] sm:$0xff]  ;;  %s828_s5 = sshll.u32 %s895_s13, 4  ;;  %s829_s5 = int_to_ptr.vmem [resolvable:$false] %s828_s5 }
  0x3d   : > { %685 = vmatpush3.bf16.msra.mxu1 %v682_v9  ;;  %v714_v34 = vpack.c.bf16 %v354_v33, %v353_v31  ;;  %v718_v37 = vpack.c.bf16 %v356_v36, %v355_v35  ;;  %v357_v38 = vld [vmem:[#allocation2 + $0xe0] sm:$0xff]  ;;  %v358_v39 = vld [vmem:[#allocation2 + $0xe8] sm:$0xff]  ;;  %v359_v41 = vld [vmem:[#allocation2 + $0xf0] sm:$0xff]  ;;  %p826_p10 = pnand %p825_p6, %p1065_p9  ;;  %s830_s6 = scalar_lea.vmem %s829_s5, 512 }
  0x3e   : > { %687 = vmatprep.subr.bf16.mxu1 %v686_v13  ;;  %711 = vmatprep.subr.bf16.mxu0 %v710_v32  ;;  %v722_v40 = vpack.c.bf16 %v358_v39, %v357_v38  ;;  %v360_v42 = vld [vmem:[#allocation2 + $0xf8] sm:$0xff]  ;;  %v361_v44 = vld [vmem:[#allocation2 + $0x100] sm:$0xff]  ;;  %v362_v45 = vld [vmem:[#allocation2 + $0x108] sm:$0xff]  ;;  %p831_p2 = scmp.lt.s32.totalorder %s1004_s26, %s829_s5  ;;  %p832_p3 = scmp.lt.s32.totalorder %s830_s6, %s824_s4 }
  0x3f   : > { %713 = vmatpush3.bf16.msra.mxu0 %v710_v32  ;;  %v726_v43 = vpack.c.bf16 %v360_v42, %v359_v41  ;;  %v730_v46 = vpack.c.bf16 %v362_v45, %v361_v44  ;;  %v363_v47 = vld [vmem:[#allocation2 + $0x110] sm:$0xff]  ;;  %v364_v48 = vld [vmem:[#allocation2 + $0x118] sm:$0xff]  ;;  %v365_v57 = vld [vmem:[#allocation2 + $0x120] sm:$0xff]  ;;  %p827_p12 = pneg %p826_p10 }
  0x40   : > { %715 = vmatprep.subr.bf16.mxu0 %v714_v34  ;;  %v734_v49 = vpack.c.bf16 %v364_v48, %v363_v47  ;;  %v546_v50 = vld [vmem:[#allocation2 + $0x10] ss:$0 sm:$0xff]  ;;  %v366_v58 = vld [vmem:[#allocation2 + $0x128] sm:$0xff]  ;;  %v549_v60 = vld [vmem:[#allocation2 + $0xa0] ss:$0 sm:$0xff]  ;;  %p833_p4 = por %p832_p3, %p831_p2 }
  0x41   : > { %689 = vmatpush3.bf16.msra.mxu1 %v686_v13  ;;  %v738_v59 = vpack.c.bf16 %v366_v58, %v365_v57  ;;  %v550_v3 = vld [vmem:[#allocation2 + $0x130] ss:$0 sm:$0xff] }
  0x42   : > { %691 = vmatprep.subr.bf16.mxu1 %v690_v16  ;;  %p834_p7 = pnand %p833_p4, %p827_p12 }
  0x43   : > { %717 = vmatpush3.bf16.msra.mxu0 %v714_v34 }
  0x44   : > { %719 = vmatprep.subr.bf16.mxu0 %v718_v37 }
  0x45   : > { %693 = vmatpush3.bf16.msra.mxu1 %v690_v16 }
  0x46   : > { %695 = vmatprep.subr.bf16.mxu1 %v694_v19 }
  0x47   : > { %721 = vmatpush3.bf16.msra.mxu0 %v718_v37 }
  0x48   : > { %723 = vmatprep.subr.bf16.mxu0 %v722_v40 }
  0x49   : > { %697 = vmatpush3.bf16.msra.mxu1 %v694_v19 }
  0x4a   : > { %699 = vmatprep.subr.bf16.mxu1 %v698_v22 }
  0x4b   : > { %725 = vmatpush3.bf16.msra.mxu0 %v722_v40 }
  0x4c   : > { %727 = vmatprep.subr.bf16.mxu0 %v726_v43 }
  0x4d   : > { %701 = vmatpush3.bf16.msra.mxu1 %v698_v22 }
  0x4e   : > { %703 = vmatprep.subr.bf16.mxu1 %v702_v25 }
  0x4f   : > { %729 = vmatpush3.bf16.msra.mxu0 %v726_v43 }
  0x50   : > { %731 = vmatprep.subr.bf16.mxu0 %v730_v46 }
  0x51   : > { %705 = vmatpush3.bf16.msra.mxu1 %v702_v25 }
  0x52   : > { %707 = vmatprep.subr.bf16.mxu1 %v706_v28 }
  0x53   : > { %733 = vmatpush3.bf16.msra.mxu0 %v730_v46 }
  0x54   : > { %735 = vmatprep.subr.bf16.mxu0 %v734_v49 }
  0x55   : > { %709 = vmatpush3.bf16.msra.mxu1 %v706_v28 }
  0x57   : > { %737 = vmatpush3.bf16.msra.mxu0 %v734_v49 }
  0x58   : > { %739 = vmatprep.subr.bf16.mxu0 %v738_v59 }
  0x5b   : > { %741 = vmatpush3.bf16.msra.mxu0 %v738_v59 }
 0x10f   : > { %v603_v51 = vpop.f32.mrb[0].mxu0 }
 0x110   : > { %v248_v52 = vadd.f32 %v603_v51, %v546_v50  ;;  %v242_v53 = vpop.f32.mrb[1].mxu0 }
 0x111   : > { %v243_v54 = vadd.f32 %v546_v50, %v242_v53 }
 0x112   : > { %v252_v56 = vmax.f32 %v248_v52, 0.0 }
 0x113   : > { %v251_v55 = vmax.f32 %v243_v54, 0.0 }
 0x115   : > { %636 = vmatprep.mubr.f32.mxu1 %v251_v55 }
 0x116   : > { %637 = vmatmul.mubr.f32.vlgmr.msra.gmra.mrb[0].mxu1 %v252_v56 }
 0x1e9   : > { %v638_v61 = vpop.f32.mrb[0].mxu1 }
 0x1ea   : > { %v346_v62 = vadd.f32 %v638_v61, %v549_v60  ;;  %v340_v63 = vpop.f32.mrb[1].mxu1 }
 0x1eb   : > { %v341_v0 = vadd.f32 %v549_v60, %v340_v63 }
 0x1ec   : > { %v350_v2 = vmax.f32 %v346_v62, 0.0 }
 0x1ed   : > { %v349_v1 = vmax.f32 %v341_v0, 0.0 }
 0x1ef   : > { %671 = vmatprep.mubr.f32.mxu0 %v349_v1 }
 0x1f0   : > { %672 = vmatmul.mubr.f32.vlgmr.msra.gmra.mrb[2].mxu0 %v350_v2 }
 0x2c3   : > { %v673_v4 = vpop.f32.mrb[2].mxu0 }
 0x2c4   : > { %v444_v5 = vadd.f32 %v673_v4, %v550_v3  ;;  %v438_v6 = vpop.f32.mrb[3].mxu0 }
 0x2c5   : > { %v439_v7 = vadd.f32 %v550_v3, %v438_v6 }
 0x2c6   : > { %448 = vst [vmem:[%s152_s25 + $0x8] sm:$0xff] %v444_v5 }
 0x2c7   : > { %447 = vst [vmem:[%s152_s25] sm:$0xff] %v439_v7 }
 0x2c8   : > { %837 = shalt.err (!%p834_p7)
}
 0x2c9   : > { %s838_s7 = scalar_lea.hbm %s1009_s30, 256  ;;  %s842_s16 = scalar_lea.hbm %s1054_s2, 512 }
 0x2ca   : > { %p839_p8 = scmp.ne.s32.totalorder %s1009_s30, %s838_s7  ;;  %p843_p1 = scmp.lt.u32.totalorder %s1009_s30, %s1054_s2 }
 0x2cb   : > { %p844_p0 = scmp.lt.u32.totalorder %s842_s16, %s838_s7  ;;  %p846_p6 = scmp.lt.u32.totalorder %s838_s7, %s1009_s30 }
 0x2cc   : > { %p840_p11 = pnand %p839_p8, %p1065_p9 }
 0x2cd   : > { %p845_p5 = por %p844_p0, %p843_p1 }
 0x2ce   : > { %p841_p13 = pneg %p840_p11 }
 0x2cf   : > { %p847_p10 = por %p846_p6, %p845_p5 }
 0x2d1   : > { %p848_p12 = pnand %p847_p10, %p841_p13 }
 0x2d3   : > { %851 = shalt.err (!%p848_p12)
}
 0x2d4   : > { %s896_s24 = smov 128   ;;  %s897_s21 = smov 8  }
 0x2d5   : > { %746 = dma.vmem_to_hbm [thread:$0]  (%p1065_p9), %s1004_s26, 256, %s1009_s30, %s1011_s3, %s896_s24, %s896_s24, %s897_s21  }
 0x2d6 PF: > { %p758_p2 = scmp.ge.s32.totalorder %s890_s12, 2  ;;  %s478_s23 = sand.u32 1, %s878_s9  }
 0x2d7   : > { %p1066_p3 = scmp.ne.s32.totalorder %s1059_s20, 0  ;;  %s479_s25 = scalar_lea.sflag [#allocation4], %s478_s23 }
 0x2d9   : > { %p753_p4 = pnand %p758_p2, %p1066_p3 }
 0x2db   : > { %873 = dma.done.wait (!%p753_p4), %s479_s25, 256  }
 0x2dc   : > { %875 = vsyncadd (!%p753_p4), %s479_s25, 4294967040  ;;  %p13_p7 = scmp.ge.s32.totalorder %s938_s15, 4   ;;  %s1067_s9 = smov %s882_s10 }
 0x2dd   : > { %s1068_s10 = smov %s886_s11  ;;  %s1069_s11 = smov %s949_s18 }
 0x2de   : > { %s1070_s12 = smov %s938_s15  ;;  %15 = sbr.rel (!%p13_p7) target bundleno = 4 (0x4), region = 68 }
 0x2e5   :  { %484 = vsyncpa [#allocation3], 1 }
 0x2e6   :  { %486 = vsyncpa [#allocation3 + $0x1], 1 }
 0x2e7   :  { %487 = vsyncpa [#allocation4], 1 }
 0x2e8   :  { %489 = vsyncpa [#allocation4 + $0x1], 1 }

</bundles_post_ra>
